<compile_context>
chip_gen: v6e
topology: v6e:2x2x1
jax: 0.10.0
libtpu: 0.0.40
codegen_flags: <defaults>
</compile_context>

<pallas_src>
import jax
import jax.numpy as jnp
from jax.experimental import pallas as pl
from jax.experimental.pallas import tpu as pltpu


def _round_up(x, n):
    return ((x + n - 1) // n) * n


def _vmem_capacity_bytes():
    try:
        return int(pltpu.get_tpu_info().vmem_capacity_bytes)
    except Exception:
        return 64 * 1024 * 1024  # conservative fallback: v7x per-TensorCore VMEM


# ----------------------------- kernels ---------------------------------------


def _ffn_kernel_resident(x_ref, w1_ref, b1_ref, w2_ref, b2_ref, o_ref):
    """Single reduction step: full W1/W2 resident in VMEM (DMA'd once per core)."""
    x = x_ref[...].astype(w1_ref.dtype)
    h = jnp.dot(x, w1_ref[...], preferred_element_type=jnp.float32)
    h = jnp.maximum(h + b1_ref[...], 0.0)
    # dropout == identity at inference.
    out = jnp.dot(h.astype(w2_ref.dtype), w2_ref[...],
                  preferred_element_type=jnp.float32)
    o_ref[...] = (out + b2_ref[...]).astype(o_ref.dtype)


def _ffn_kernel_chunked(x_ref, w1_ref, b1_ref, w2_ref, b2_ref, o_ref, acc_ref):
    """pf chunked on the last ('arbitrary') grid axis; accumulate in f32 VMEM."""
    j = pl.program_id(1)

    @pl.when(j == 0)
    def _():
        acc_ref[...] = jnp.zeros_like(acc_ref)

    x = x_ref[...].astype(w1_ref.dtype)
    h = jnp.dot(x, w1_ref[...], preferred_element_type=jnp.float32)
    h = jnp.maximum(h + b1_ref[...], 0.0)
    # dropout == identity at inference.
    acc_ref[...] += jnp.dot(h.astype(w2_ref.dtype), w2_ref[...],
                            preferred_element_type=jnp.float32)

    @pl.when(j == pl.num_programs(1) - 1)
    def _():
        o_ref[...] = (acc_ref[...] + b2_ref[...]).astype(o_ref.dtype)


# --------------------------- tile selection -----------------------------------


def _select_tiles(m, hid_p, pf_p, x_item, w_item, o_item, budget):
    """Returns (tm, tpf, resident). All sizes static (trace-time Python)."""
    tm_cap = _round_up(m, 8)
    if m >= 16:
        # Guarantee >=2 token tiles so v7x's two TensorCores both get work on the
        # "parallel" axis (costs ~0.35us extra on single-TC v5e/v6e; negligible).
        tm_cap = min(tm_cap, _round_up((m + 1) // 2, 8))

    def vmem_resident(tm):
        w = 2 * hid_p * pf_p * w_item * 2          # w1 + w2, double-buffered
        xb = 2 * tm * hid_p * x_item               # x tile, double-buffered
        ob = 2 * tm * hid_p * o_item               # out tile, double-buffered
        hi = tm * pf_p * 4 + tm * hid_p * 4        # f32 intermediates
        misc = 4 * (pf_p + hid_p) * 4
        return w + xb + ob + hi + misc

    def vmem_chunked(tm, tpf):
        w = 2 * (hid_p * tpf + tpf * hid_p) * w_item
        xb = 2 * tm * hid_p * x_item
        ob = 2 * tm * hid_p * o_item
        acc = tm * hid_p * 4
        hi = tm * tpf * 4 + tm * hid_p * 4
        misc = 4 * (tpf + hid_p) * 4
        return w + xb + ob + acc + hi + misc

    tm_candidates = [t for t in (1024, 768, 512, 384, 256, 128, 64, 32, 16, 8)
                     if t <= tm_cap]
    if tm_cap not in tm_candidates:
        tm_candidates = [tm_cap] + tm_candidates

    # 1) Prefer fully VMEM-resident weights (weights DMA'd once for the whole grid;
    #    single reduction step -> compute-bound). tm capped at 512 here.
    resident_tms = [t for t in tm_candidates if t <= 512] or tm_candidates
    for tm in resident_tms:
        if vmem_resident(tm) <= budget:
            return tm, pf_p, True

    # 2) Chunked pf: pick the largest tm that fits (intensity ~ tm flops / weight byte),
    #    with tpf a divisor of pf_p (no wasted zero columns).
    tpf_candidates = [k for k in (1024, 768, 512, 384, 256, 128)
                      if k <= pf_p and pf_p % k == 0] or [128]
    for tm in tm_candidates:
        for tpf in tpf_candidates:
            if vmem_chunked(tm, tpf) <= budget:
                return tm, tpf, False
    return tm_candidates[-1], tpf_candidates[-1], False


# ------------------------------ wrapper ---------------------------------------


def prepare_params(w1, b1, w2, b2, mxu_dtype=jnp.bfloat16):
    """Pad / cast the weights once at init (hoisted out of the per-call path).

    w1: (hid, pf) = fc_1.weight.T, b1: (pf,), w2: (pf, hid) = fc_2.weight.T, b2: (hid,).
    mxu_dtype: MXU operand dtype (bf16 recommended); accumulation stays f32.
    """
    hid, pf = w1.shape
    hid_p = _round_up(hid, 128)
    pf_p = _round_up(pf, 128)
    w1p = jnp.pad(w1, ((0, hid_p - hid), (0, pf_p - pf))).astype(mxu_dtype)
    w2p = jnp.pad(w2, ((0, pf_p - pf), (0, hid_p - hid))).astype(mxu_dtype)
    b1p = jnp.pad(b1.astype(jnp.float32), (0, pf_p - pf)).reshape(1, pf_p)
    b2p = jnp.pad(b2.astype(jnp.float32), (0, hid_p - hid)).reshape(1, hid_p)
    return w1p, b1p, w2p, b2p


@jax.jit
def positionwise_feedforward(x, w1p, b1p, w2p, b2p):
    """x: (batch, seq, hid). w1p/b1p/w2p/b2p: outputs of prepare_params()."""
    batch, seq, hid = x.shape
    hid_p, pf_p = w1p.shape
    out_dtype = x.dtype
    m = batch * seq

    x_item = jnp.dtype(x.dtype).itemsize
    w_item = jnp.dtype(w1p.dtype).itemsize
    o_item = jnp.dtype(out_dtype).itemsize

    vmem_cap = _vmem_capacity_bytes()
    budget = min(int(vmem_cap * 0.85), 112 * 1024 * 1024)

    tm, tpf, resident = _select_tiles(m, hid_p, pf_p, x_item, w_item, o_item, budget)

    m_p = _round_up(m, tm)
    x2d = x.reshape(m, hid)
    if m_p != m or hid_p != hid:
        x2d = jnp.pad(x2d, ((0, m_p - m), (0, hid_p - hid)))

    n_m_tiles = m_p // tm
    flops = 4 * m_p * hid_p * pf_p
    weight_passes = 1 if resident else n_m_tiles
    bytes_accessed = (m_p * hid_p * x_item
                      + 2 * hid_p * pf_p * w_item * weight_passes
                      + m_p * hid_p * o_item)

    if resident:
        grid = (n_m_tiles,)
        in_specs = [
            pl.BlockSpec((tm, hid_p), lambda i: (i, 0)),      # x token tile
            pl.BlockSpec((hid_p, pf_p), lambda i: (0, 0)),    # w1 (resident)
            pl.BlockSpec((1, pf_p), lambda i: (0, 0)),        # b1
            pl.BlockSpec((pf_p, hid_p), lambda i: (0, 0)),    # w2 (resident)
            pl.BlockSpec((1, hid_p), lambda i: (0, 0)),       # b2
        ]
        out_specs = pl.BlockSpec((tm, hid_p), lambda i: (i, 0))
        scratch_shapes = []
        kernel = _ffn_kernel_resident
        dims = ("parallel",)
    else:
        grid = (n_m_tiles, pf_p // tpf)
        in_specs = [
            pl.BlockSpec((tm, hid_p), lambda i, j: (i, 0)),   # x token tile
            pl.BlockSpec((hid_p, tpf), lambda i, j: (0, j)),  # w1 chunk
            pl.BlockSpec((1, tpf), lambda i, j: (0, j)),      # b1 chunk
            pl.BlockSpec((tpf, hid_p), lambda i, j: (j, 0)),  # w2 chunk
            pl.BlockSpec((1, hid_p), lambda i, j: (0, 0)),    # b2
        ]
        out_specs = pl.BlockSpec((tm, hid_p), lambda i, j: (i, 0))
        scratch_shapes = [pltpu.VMEM((tm, hid_p), jnp.float32)]
        kernel = _ffn_kernel_chunked
        dims = ("parallel", "arbitrary")

    out2d = pl.pallas_call(
        kernel,
        out_shape=jax.ShapeDtypeStruct((m_p, hid_p), out_dtype),
        grid_spec=pltpu.PrefetchScalarGridSpec(
            num_scalar_prefetch=0,
            grid=grid,
            in_specs=in_specs,
            out_specs=out_specs,
            scratch_shapes=scratch_shapes,
        ),
        compiler_params=pltpu.CompilerParams(
            dimension_semantics=dims,
            vmem_limit_bytes=budget,
        ),
        cost_estimate=pl.CostEstimate(
            flops=flops, transcendentals=0, bytes_accessed=bytes_accessed),
    )(x2d, w1p, b1p, w2p, b2p)

    if m_p != m or hid_p != hid:
        out2d = out2d[:m, :hid]
    return out2d.reshape(batch, seq, hid)


def init_params(key, hid_dim, pf_dim, dtype=jnp.float32):
    """Deterministic synthetic init matching nn.Conv1d(hid, pf, 1) / Conv1d(pf, hid, 1).

    Conv1d weight is (out_ch, in_ch, 1); kernel-size-1 conv == linear, so we store
    the transposed (in_ch, out_ch) matrices used by the kernel's x @ W layout.
    """
    k1, k2, k3, k4 = jax.random.split(key, 4)
    s1 = 1.0 / jnp.sqrt(hid_dim)
    s2 = 1.0 / jnp.sqrt(pf_dim)
    w1 = jax.random.uniform(k1, (hid_dim, pf_dim), dtype, -s1, s1)   # fc_1.weight.T
    b1 = jax.random.uniform(k2, (pf_dim,), dtype, -s1, s1)           # fc_1.bias
    w2 = jax.random.uniform(k3, (pf_dim, hid_dim), dtype, -s2, s2)   # fc_2.weight.T
    b2 = jax.random.uniform(k4, (hid_dim,), dtype, -s2, s2)          # fc_2.bias
    return w1, b1, w2, b2


if __name__ == "__main__":
    batch, seq, hid_dim, pf_dim = 2, 8, 32, 64
    key = jax.random.PRNGKey(0)
    kx, kp = jax.random.split(key)

    x = jax.random.normal(kx, (batch, seq, hid_dim), jnp.float32)
    w1, b1, w2, b2 = init_params(kp, hid_dim, pf_dim)

    # Reference in plain JAX (same math as the PyTorch forward, eval mode).
    ref = jnp.maximum(x @ w1 + b1, 0.0) @ w2 + b2

    # Recommended path: bf16 MXU operands (default), f32 accumulation / bias / ReLU.
    params_bf16 = prepare_params(w1, b1, w2, b2)          # pad/cast once, not per call
    out_bf16 = jax.block_until_ready(positionwise_feedforward(x, *params_bf16))
    assert out_bf16.shape == (batch, seq, hid_dim)
    assert jnp.allclose(out_bf16, ref, atol=5e-2, rtol=5e-2)

    # Full f32 operand path for an exactness check.
    params_f32 = prepare_params(w1, b1, w2, b2, mxu_dtype=jnp.float32)
    out_f32 = jax.block_until_ready(positionwise_feedforward(x, *params_f32))
    assert out_f32.shape == (batch, seq, hid_dim)
    assert jnp.allclose(out_f32, ref, atol=1e-5, rtol=1e-5)

    print("KERNEL_OK")
</pallas_src>

<mosaic_0001>
module attributes {stable_mosaic.version = 11 : i64} {
  func.func @_ffn_kernel_resident(%arg0: i32, %arg1: memref<8x128xf32, #tpu.memory_space<vmem>>, %arg2: memref<128x128xbf16, #tpu.memory_space<vmem>>, %arg3: memref<1x128xf32, #tpu.memory_space<vmem>>, %arg4: memref<128x128xbf16, #tpu.memory_space<vmem>>, %arg5: memref<1x128xf32, #tpu.memory_space<vmem>>, %arg6: memref<8x128xf32, #tpu.memory_space<vmem>>) attributes {dimension_semantics = [#tpu.dimension_semantics<parallel>], iteration_bounds = array<i64: 2>, scalar_prefetch = 0 : i64, scratch_operands = 0 : i64, tpu.core_type = #tpu.core_type<tc>, window_params = [{transform_indices = @transform_0, window_bounds = array<i64: 8, 128>}, {pipeline_mode = #tpu.pipeline_mode<synchronous>, transform_indices = @transform_1, window_bounds = array<i64: 128, 128>}, {pipeline_mode = #tpu.pipeline_mode<synchronous>, transform_indices = @transform_2, window_bounds = array<i64: 1, 128>}, {pipeline_mode = #tpu.pipeline_mode<synchronous>, transform_indices = @transform_3, window_bounds = array<i64: 128, 128>}, {pipeline_mode = #tpu.pipeline_mode<synchronous>, transform_indices = @transform_4, window_bounds = array<i64: 1, 128>}, {transform_indices = @transform_5, window_bounds = array<i64: 8, 128>}]} {
    %c0 = arith.constant 0 : index
    %c0_0 = arith.constant 0 : index
    %0 = vector.load %arg1[%c0, %c0_0] : memref<8x128xf32, #tpu.memory_space<vmem>>, vector<8x128xf32>
    %1 = arith.truncf %0 : vector<8x128xf32> to vector<8x128xbf16>
    %c0_1 = arith.constant 0 : index
    %c0_2 = arith.constant 0 : index
    %2 = vector.load %arg2[%c0_1, %c0_2] : memref<128x128xbf16, #tpu.memory_space<vmem>>, vector<128x128xbf16>
    %cst = arith.constant dense<0.000000e+00> : vector<8x128xf32>
    %3 = tpu.matmul %1, %2, %cst {dimension_numbers = #tpu.dot_dimension_numbers<[1], [0], [0], [1], [0, 0, 1, 1], [], []>} : vector<8x128xbf16>, vector<128x128xbf16>, vector<8x128xf32> -> vector<8x128xf32>
    %c0_3 = arith.constant 0 : index
    %c0_4 = arith.constant 0 : index
    %4 = vector.load %arg3[%c0_3, %c0_4] : memref<1x128xf32, #tpu.memory_space<vmem>>, vector<1x128xf32>
    %5 = vector.broadcast %4 : vector<1x128xf32> to vector<8x128xf32>
    %6 = arith.addf %3, %5 : vector<8x128xf32>
    %cst_5 = arith.constant 0.000000e+00 : f32
    %7 = vector.broadcast %cst_5 : f32 to vector<8x128xf32>
    %8 = arith.maximumf %6, %7 : vector<8x128xf32>
    %9 = arith.truncf %8 : vector<8x128xf32> to vector<8x128xbf16>
    %c0_6 = arith.constant 0 : index
    %c0_7 = arith.constant 0 : index
    %10 = vector.load %arg4[%c0_6, %c0_7] : memref<128x128xbf16, #tpu.memory_space<vmem>>, vector<128x128xbf16>
    %cst_8 = arith.constant dense<0.000000e+00> : vector<8x128xf32>
    %11 = tpu.matmul %9, %10, %cst_8 {dimension_numbers = #tpu.dot_dimension_numbers<[1], [0], [0], [1], [0, 0, 1, 1], [], []>} : vector<8x128xbf16>, vector<128x128xbf16>, vector<8x128xf32> -> vector<8x128xf32>
    %c0_9 = arith.constant 0 : index
    %c0_10 = arith.constant 0 : index
    %12 = vector.load %arg5[%c0_9, %c0_10] : memref<1x128xf32, #tpu.memory_space<vmem>>, vector<1x128xf32>
    %13 = vector.broadcast %12 : vector<1x128xf32> to vector<8x128xf32>
    %14 = arith.addf %11, %13 : vector<8x128xf32>
    %c0_11 = arith.constant 0 : index
    %c0_12 = arith.constant 0 : index
    %15 = vector.load %arg6[%c0_11, %c0_12] : memref<8x128xf32, #tpu.memory_space<vmem>>, vector<8x128xf32>
    tpu.vector_store %arg6[%c0_11, %c0_12], %14 {strides = array<i32>} : memref<8x128xf32, #tpu.memory_space<vmem>>, vector<8x128xf32>,
    return
  }
  func.func @transform_0(%arg0: i32) -> (i32, i32) {
    %c0_i32 = arith.constant 0 : i32
    %c0_i32_0 = arith.constant 0 : i32
    return %arg0, %c0_i32 : i32, i32
  }
  func.func @transform_1(%arg0: i32) -> (i32, i32) {
    %c0_i32 = arith.constant 0 : i32
    %c0_i32_0 = arith.constant 0 : i32
    %c0_i32_1 = arith.constant 0 : i32
    return %c0_i32, %c0_i32_0 : i32, i32
  }
  func.func @transform_2(%arg0: i32) -> (i32, i32) {
    %c0_i32 = arith.constant 0 : i32
    %c0_i32_0 = arith.constant 0 : i32
    %c0_i32_1 = arith.constant 0 : i32
    return %c0_i32, %c0_i32_0 : i32, i32
  }
  func.func @transform_3(%arg0: i32) -> (i32, i32) {
    %c0_i32 = arith.constant 0 : i32
    %c0_i32_0 = arith.constant 0 : i32
    %c0_i32_1 = arith.constant 0 : i32
    return %c0_i32, %c0_i32_0 : i32, i32
  }
  func.func @transform_4(%arg0: i32) -> (i32, i32) {
    %c0_i32 = arith.constant 0 : i32
    %c0_i32_0 = arith.constant 0 : i32
    %c0_i32_1 = arith.constant 0 : i32
    return %c0_i32, %c0_i32_0 : i32, i32
  }
  func.func @transform_5(%arg0: i32) -> (i32, i32) {
    %c0_i32 = arith.constant 0 : i32
    %c0_i32_0 = arith.constant 0 : i32
    return %arg0, %c0_i32 : i32, i32
  }
}

</mosaic_0001>

<bundles_post_ra>
// kernel: positionwise_feedforward.1
= control target key start
LH: loop header
LB: loop body
LE: loop exit
PB: predicated region body
PF: predicated region fallthrough
CT: control target
= control target key end

     0   :  { %10 = vsyncpa [#allocation3], 0  ;;  %s870_s0 = inlined_call_operand.vmem [shape: f32[16,128], index: 0, kind: input, shape index: {}]   ;;  %s871_s1 = inlined_call_operand.hbm [shape: bf16[128,128], index: 1, kind: input, shape index: {}]   ;;  %s872_s2 = inlined_call_operand.vmem [shape: f32[1,128], index: 2, kind: input, shape index: {}]   ;;  %s873_s3 = inlined_call_operand.hbm [shape: bf16[128,128], index: 3, kind: input, shape index: {}]   ;;  %s874_s4 = inlined_call_operand.vmem [shape: f32[1,128], index: 4, kind: input, shape index: {}]   ;;  %s875_s5 = inlined_call_operand.vmem [shape: f32[16,128], index: 5, kind: output, shape index: {}]  }
   0x1   :  { %11 = vsyncpa [#allocation5], 0  ;;  %s795_s18 = smov 0  }
   0x2 LB: > { %s801_s19 = sadd.s32 4294967295, %s757_s18   ;;  %p555_p0 = scmp.ge.s32.totalorder %s757_s18, 1  ;;  %s757_s18 = sphi %s795_s18, %s17_s18  }
   0x3   : > { %p158_p1 = scmp.lt.s32.totalorder %s757_s18, 3  ;;  %s759_s20 = smov [#allocation2]  }
   0x4   : > { %s170_s21 = sshll.u32 %s759_s20, 4  ;;  %p657_p3 = scmp.eq.s32.totalorder %s801_s19, 0  ;;  %s171_s21 = int_to_ptr.vmem [resolvable:$true] %s170_s21 }
   0x5   : > { %p805_p2 = pnand %p555_p0, %p158_p1  ;;  %s760_s23 = smov [#allocation4]  }
   0x6   : > { %s186_s24 = sshll.u32 %s760_s23, 4  ;;  %s702_s26 = scalar_lea.vmem %s171_s21, 1024  ;;  %s187_s24 = int_to_ptr.vmem [resolvable:$true] %s186_s24 }
   0x7   : > { %p650_p4 = pneg %p805_p2  ;;  %p703_p7 = scmp.ne.s32.totalorder %s171_s21, %s702_s26 }
   0x8   : > { %p710_p10 = scmp.lt.s32.totalorder %s171_s21, %s171_s21  ;;  %p711_p11 = scmp.lt.s32.totalorder %s702_s26, %s702_s26 }
   0x9   : > { %p814_p5 = pnand %p657_p3, %p650_p4 }
   0xa   : > { %p712_p12 = por %p711_p11, %p710_p10 }
   0xb   : > { %p693_p6 = pneg %p814_p5 }
   0xd   : > { %p705_p8 = pnand %p703_p7, %p693_p6 }
   0xf   : > { %p706_p9 = pneg %p705_p8 }
  0x11   : > { %p713_p13 = pnand %p712_p12, %p706_p9 }
  0x13   : > { %716 = shalt.err (!%p713_p13)
}
  0x14   : > { %s761_s27 = smov 64   ;;  %s762_s28 = smov 4  }
  0x15   : > { %653 = dma.hbm_to_vmem [thread:$0]  (!%p814_p5), %s871_s1, 1024, %s171_s21, [#allocation3], %s761_s27, %s761_s27, %s762_s28  }
  0x16   : > { %s728_s6 = scalar_lea.vmem %s187_s24, 1024  ;;  %p736_p7 = scmp.lt.s32.totalorder %s187_s24, %s187_s24 }
  0x17   : > { %p729_p0 = scmp.ne.s32.totalorder %s187_s24, %s728_s6  ;;  %p737_p8 = scmp.lt.s32.totalorder %s728_s6, %s728_s6 }
  0x19   : > { %p731_p1 = pnand %p729_p0, %p693_p6  ;;  %p738_p10 = por %p737_p8, %p736_p7 }
  0x1b   : > { %p732_p4 = pneg %p731_p1 }
  0x1d   : > { %p739_p9 = pnand %p738_p10, %p732_p4 }
  0x1f   : > { %742 = shalt.err (!%p739_p9)
}
  0x20   : > { %656 = dma.hbm_to_vmem [thread:$0]  (!%p814_p5), %s873_s3, 1024, %s187_s24, [#allocation5], %s761_s27, %s761_s27, %s762_s28  }
  0x21   : > { %212 = sbr.rel (%p805_p2) target bundleno = 473 (0x1d9), region = 40 }
  0x26   : > { %748 = dma.done.wait (%p657_p3), [#allocation3], 1024  }
  0x27   : > { %750 = vsyncadd (%p657_p3), [#allocation3], 4294966272 }
  0x28   : > { %752 = dma.done.wait (%p657_p3), [#allocation5], 1024  }
  0x29   : > { %754 = vsyncadd (%p657_p3), [#allocation5], 4294966272  ;;  %v763_v0 = vmov 0.0   ;;  %vm764_vm0 = vmmov 0   ;;  %v675_v1 = vld [vmem:[#allocation2 + $0x38] sm:$0xff]   ;;  %v676_v2 = vld [vmem:[#allocation2 + $0x30] sm:$0xff]  }
  0x2a   : > { %602 = vmatprep.subr.bf16.mxu0 %v763_v0  ;;  %618 = vmatprep.mubr.msk.bf16.mxu0 %vm764_vm0, %v763_v0  ;;  %v677_v3 = vld [vmem:[#allocation2 + $0x28] sm:$0xff]   ;;  %v683_v4 = vld [vmem:[#allocation4 + $0x38] sm:$0xff]   ;;  %v678_v5 = vld [vmem:[#allocation2 + $0x20] sm:$0xff]   ;;  %p242_p2 = scmp.lt.s32.totalorder %s801_s19, 1 }
  0x2b   : > { %622 = vmatprep.subr.bf16.mxu1 %v763_v0  ;;  %638 = vmatprep.mubr.msk.bf16.mxu1 %vm764_vm0, %v763_v0  ;;  %v684_v6 = vld [vmem:[#allocation4 + $0x30] sm:$0xff]   ;;  %v679_v7 = vld [vmem:[#allocation2 + $0x18] sm:$0xff]   ;;  %v685_v8 = vld [vmem:[#allocation4 + $0x28] sm:$0xff]  }
  0x2c   : > { %603 = vmatpush3.bf16.msra.mxu0 %v675_v1  ;;  %623 = vmatpush3.bf16.msra.mxu1 %v683_v4  ;;  %s879_s19 = smov (!%p242_p2, %s801_s19), 1  ;;  %v680_v9 = vld [vmem:[#allocation2 + $0x10] sm:$0xff]   ;;  %v686_v10 = vld [vmem:[#allocation4 + $0x20] sm:$0xff]   ;;  %v681_v11 = vld [vmem:[#allocation2 + $0x8] sm:$0xff]  }
  0x2d   : > { %604 = vmatprep.subr.bf16.mxu0 %v763_v0  ;;  %624 = vmatprep.subr.bf16.mxu1 %v763_v0  ;;  %s562_s9 = sshll.u32 %s879_s19, 3  ;;  %v687_v12 = vld [vmem:[#allocation4 + $0x18] sm:$0xff]   ;;  %v682_v13 = vld [vmem:[#allocation2] sm:$0xff]   ;;  %v688_v15 = vld [vmem:[#allocation4 + $0x10] sm:$0xff]  }
  0x2e   : > { %s245_s12 = scalar_lea.vmem %s870_s0, %s562_s9  ;;  %v689_v17 = vld [vmem:[#allocation4 + $0x8] sm:$0xff]   ;;  %v690_v18 = vld [vmem:[#allocation4] sm:$0xff]   ;;  %s249_s21 = scalar_lea.vmem %s875_s5, %s562_s9 }
  0x2f   : > { %v251_v14 = vld [vmem:[%s245_s12] sm:$0xff] }
  0x30   : > { %605 = vmatpush3.bf16.msra.mxu0 %v676_v2  ;;  %625 = vmatpush3.bf16.msra.mxu1 %v684_v6  ;;  %v252_v16 = vpack.c.bf16 %v251_v14, %v251_v14  ;;  %v564_v19 = vld [vmem:[%s872_s2] ss:$0 sm:$0xff] }
  0x31   : > { %606 = vmatprep.subr.bf16.mxu0 %v763_v0  ;;  %626 = vmatprep.subr.bf16.mxu1 %v763_v0  ;;  %v573_v27 = vld [vmem:[%s874_s4] ss:$0 sm:$0xff] }
  0x34   : > { %607 = vmatpush3.bf16.msra.mxu0 %v677_v3  ;;  %627 = vmatpush3.bf16.msra.mxu1 %v685_v8 }
  0x35   : > { %608 = vmatprep.subr.bf16.mxu0 %v763_v0  ;;  %628 = vmatprep.subr.bf16.mxu1 %v763_v0 }
  0x38   : > { %609 = vmatpush3.bf16.msra.mxu0 %v678_v5  ;;  %629 = vmatpush3.bf16.msra.mxu1 %v686_v10 }
  0x39   : > { %610 = vmatprep.subr.bf16.mxu0 %v763_v0  ;;  %630 = vmatprep.subr.bf16.mxu1 %v763_v0 }
  0x3c   : > { %611 = vmatpush3.bf16.msra.mxu0 %v679_v7  ;;  %631 = vmatpush3.bf16.msra.mxu1 %v687_v12 }
  0x3d   : > { %612 = vmatprep.subr.bf16.mxu0 %v763_v0  ;;  %632 = vmatprep.subr.bf16.mxu1 %v763_v0 }
  0x40   : > { %613 = vmatpush3.bf16.msra.mxu0 %v680_v9  ;;  %633 = vmatpush3.bf16.msra.mxu1 %v688_v15 }
  0x41   : > { %614 = vmatprep.subr.bf16.mxu0 %v763_v0  ;;  %634 = vmatprep.subr.bf16.mxu1 %v763_v0 }
  0x44   : > { %615 = vmatpush3.bf16.msra.mxu0 %v681_v11  ;;  %635 = vmatpush3.bf16.msra.mxu1 %v689_v17 }
  0x45   : > { %616 = vmatprep.subr.bf16.mxu0 %v763_v0  ;;  %636 = vmatprep.subr.bf16.mxu1 %v763_v0 }
  0x48   : > { %617 = vmatpush3.bf16.msra.mxu0 %v682_v13  ;;  %637 = vmatpush3.bf16.msra.mxu1 %v690_v18 }
  0x4b   : > { %619 = vmatmul.mubr.bf16.vlgmr.msra.gmra.mxu0 %v252_v16 }
 0x10b   : > { %v358_v20 = vpop.f32.mrf.mxu0 }
 0x10c   : > { %v359_v21 = vadd.f32 %v564_v19, %v358_v20 }
 0x10d   : > { %v620_v22 = vpop.f32.mrf.mxu0 }
 0x10e   : > { %v364_v23 = vmax.f32 %v359_v21, 0.0 }
 0x10f   : > { %v361_v24 = vpop.f32.mrf.mxu0 }
 0x110   : > { %v365_v25 = vpack.c.bf16 %v364_v23, %v364_v23 }
 0x111   : > { %v621_v26 = vpop.f32.mrf.mxu0 }
 0x112   : > { %639 = vmatmul.mubr.bf16.vlgmr.msra.gmra.mxu1 %v365_v25 }
 0x1d2   : > { %v471_v28 = vpop.f32.mrf.mxu1 }
 0x1d3   : > { %v472_v29 = vadd.f32 %v573_v27, %v471_v28 }
 0x1d4   : > { %v640_v30 = vpop.f32.mrf.mxu1 }
 0x1d5   : > { %477 = vst [vmem:[%s249_s21] sm:$0xff] %v472_v29 }
 0x1d6   : > { %v474_v31 = vpop.f32.mrf.mxu1 }
 0x1d8   : > { %v641_v32 = vpop.f32.mrf.mxu1 }
 0x1d9 PF: > { %s17_s18 = sadd.s32 1, %s757_s18  }
 0x1da   : > { %p14_p3 = scmp.ge.s32.totalorder %s17_s18, 4  }
 0x1dc   :  { %16 = sbr.rel (!%p14_p3) target bundleno = 2 (0x2), region = 79 }
 0x1e1   :  { %497 = vsyncpa [#allocation3], 1 }
 0x1e2   :  { %499 = vsyncpa [#allocation3 + $0x1], 1 }
 0x1e3   :  { %500 = vsyncpa [#allocation5], 1 }

</bundles_post_ra>
